<compile_context>
chip_gen: v7x
topology: tpu7x:2x2x1
jax: 0.10.0
libtpu: 0.0.40
codegen_flags: <defaults>
</compile_context>

<pallas_src>
import functools

import jax
import jax.numpy as jnp
from jax import lax
from jax.experimental import pallas as pl
from jax.experimental.pallas import tpu as pltpu


# --------------------------- parameter packing ------------------------------
# One (8,128)-tile-aligned f32 slab holding all 6 parameter tensors
# (PyTorch layout: W is [out, in], b is [out]):
#   rows  0: 8, cols 0:10 -> W1 (8,10) | col 10 -> b1
#   rows  8:14, cols 0: 8 -> W2 (6, 8) | col  8 -> b2   (rows 14,15 stay zero)
#   rows 16:20, cols 0: 6 -> W3 (4, 6) | col  8 -> b3   (cols 6,7 stay zero)
_SLAB_SHAPE = (24, 128)


def pack_params(params):
    slab = jnp.zeros(_SLAB_SHAPE, jnp.float32)
    slab = slab.at[0:8, 0:10].set(params["w1"].astype(jnp.float32))
    slab = slab.at[0:8, 10].set(params["b1"].astype(jnp.float32))
    slab = slab.at[8:14, 0:8].set(params["w2"].astype(jnp.float32))
    slab = slab.at[8:14, 8].set(params["b2"].astype(jnp.float32))
    slab = slab.at[16:20, 0:6].set(params["w3"].astype(jnp.float32))
    slab = slab.at[16:20, 8].set(params["b3"].astype(jnp.float32))  # col 8 so cols 6,7 stay 0
    return slab


# ------------------------------- kernel -------------------------------------
def mlp_kernel(x_ref, p_ref, o_ref):
    # x_ref: [TB, 10]  batch rows on sublanes (HBM layout, no wrapper transpose)
    # p_ref: [24, 128] packed parameter slab (resident: constant index_map)
    # o_ref: [4, TB]   lane-dense transposed output tile (out.T)
    x = x_ref[...]
    p = p_ref[...]
    w1, b1 = p[0:8, 0:10], p[0:8, 10:11]   # [8,10], [8,1]
    w2, b2 = p[8:16, 0:8], p[8:16, 8:9]    # [8,8] (rows 6,7 zero), [8,1] (rows 6,7 zero)
    w3, b3 = p[16:20, 0:8], p[16:20, 8:9]  # [4,8] (cols 6,7 zero), [4,1]

    hi = lax.Precision.HIGHEST

    # Layer 1: Linear(10->8) + ReLU in transposed form: W1 @ x.T -> [8, TB].
    # Contracting the feature dim of both operands puts the transpose on the MXU.
    h1 = lax.dot_general(w1, x, (((1,), (1,)), ((), ())),
                         precision=hi, preferred_element_type=jnp.float32)
    h1 = jnp.maximum(h1 + b1, 0.0)

    # Layer 2: Linear(8->6) + ReLU (output padded to 8 zero rows -> aligned K for layer 3).
    h2 = jnp.maximum(
        jnp.dot(w2, h1, precision=hi, preferred_element_type=jnp.float32) + b2, 0.0)

    # Layer 3: Linear(6->4), no activation (zero-padded K columns contribute nothing).
    o_ref[...] = (
        jnp.dot(w3, h2, precision=hi, preferred_element_type=jnp.float32) + b3
    ).astype(o_ref.dtype)


def _round_up(n, m):
    return ((n + m - 1) // m) * m


def linear_test_net(x, params, *, tb_max=65536):
    """x: [B, 10].  params: PyTorch-layout dict (w: [out,in], b: [out]).  Returns [B, 4]."""
    B = x.shape[0]
    x = x.astype(jnp.float32)

    # Batch tile: multiple of 128.  ~112*TB bytes of double-buffered VMEM per step
    # (TB=64K ~ 7.4 MiB, under the 16 MiB v5e scoped default).  Target ~half the
    # batch per tile so the "parallel" axis has >= 2 tiles for v7x's 2 TensorCores.
    TB = max(128, min(tb_max, _round_up(pl.cdiv(B, 2), 128)))
    grid = pl.cdiv(B, TB)                      # ragged last block: Pallas masks OOB stores

    slab = pack_params(params)

    flops = 2 * B * (10 * 8 + 8 * 8 + 8 * 4)
    bytes_accessed = B * (10 + 4) * 4 + _SLAB_SHAPE[0] * _SLAB_SHAPE[1] * 4

    out_t = pl.pallas_call(
        mlp_kernel,
        out_shape=jax.ShapeDtypeStruct((4, B), jnp.float32),
        grid_spec=pltpu.PrefetchScalarGridSpec(
            num_scalar_prefetch=0,
            grid=(grid,),
            in_specs=[
                pl.BlockSpec((TB, 10), lambda i: (i, 0)),     # x: batch-tiled, untransposed
                pl.BlockSpec(_SLAB_SHAPE, lambda i: (0, 0)),  # params: one resident DMA
            ],
            out_specs=pl.BlockSpec((4, TB), lambda i: (0, i)),  # lane-dense out.T tile
        ),
        compiler_params=pltpu.CompilerParams(
            dimension_semantics=("parallel",),   # batch tiles shard across TCs (v7x megacore)
        ),
        cost_estimate=pl.CostEstimate(
            flops=flops, transcendentals=0, bytes_accessed=bytes_accessed),
    )(x, slab)

    # Single wrapper transpose restores the module's [B, 4] output layout.
    return out_t.T


# ------------------------- init & pure-JAX reference -------------------------
def init_params(key):
    """nn.Linear-style init (uniform +-1/sqrt(fan_in)), PyTorch layout [out,in]/[out]."""
    dims = [(10, 8), (8, 6), (6, 4)]
    params = {}
    for i, (fan_in, fan_out) in enumerate(dims, start=1):
        key, kw, kb = jax.random.split(key, 3)
        bound = 1.0 / jnp.sqrt(float(fan_in))
        params[f"w{i}"] = jax.random.uniform(kw, (fan_out, fan_in), jnp.float32, -bound, bound)
        params[f"b{i}"] = jax.random.uniform(kb, (fan_out,), jnp.float32, -bound, bound)
    return params


def reference(x, p):
    h = jnp.maximum(x @ p["w1"].T + p["b1"], 0.0)
    h = jnp.maximum(h @ p["w2"].T + p["b2"], 0.0)
    return h @ p["w3"].T + p["b3"]


if __name__ == "__main__":
    key = jax.random.PRNGKey(0)
    key, kx = jax.random.split(key)
    B = 8
    x = jax.random.normal(kx, (B, 10), jnp.float32)
    params = init_params(key)

    fwd = jax.jit(functools.partial(linear_test_net, params=params))
    out = fwd(x)
    jax.block_until_ready(out)

    ref = reference(x, params)
    assert out.shape == (B, 4), out.shape
    assert jnp.allclose(out, ref, atol=1e-5, rtol=1e-5), "mismatch vs pure-JAX reference"
    print("KERNEL_OK")
</pallas_src>

<mosaic_0001>
module attributes {stable_mosaic.version = 11 : i64} {
  func.func @mlp_kernel(%arg0: i32, %arg1: memref<128x10xf32, #tpu.memory_space<vmem>>, %arg2: memref<24x128xf32, #tpu.memory_space<vmem>>, %arg3: memref<4x128xf32, #tpu.memory_space<vmem>>) attributes {dimension_semantics = [#tpu.dimension_semantics<parallel>], iteration_bounds = array<i64: 1>, scalar_prefetch = 0 : i64, scratch_operands = 0 : i64, tpu.core_type = #tpu.core_type<tc>, window_params = [{transform_indices = @transform_0, window_bounds = array<i64: 128, 10>}, {pipeline_mode = #tpu.pipeline_mode<synchronous>, transform_indices = @transform_1, window_bounds = array<i64: 24, 128>}, {transform_indices = @transform_2, window_bounds = array<i64: 4, 128>}]} {
    %c0 = arith.constant 0 : index
    %c0_0 = arith.constant 0 : index
    %0 = vector.load %arg1[%c0, %c0_0] : memref<128x10xf32, #tpu.memory_space<vmem>>, vector<128x10xf32>
    %c0_1 = arith.constant 0 : index
    %c0_2 = arith.constant 0 : index
    %1 = vector.load %arg2[%c0_1, %c0_2] : memref<24x128xf32, #tpu.memory_space<vmem>>, vector<24x128xf32>
    %2 = vector.extract_strided_slice %1 {offsets = [0, 0], sizes = [8, 10], strides = [1, 1]} : vector<24x128xf32> to vector<8x10xf32>
    %3 = vector.extract_strided_slice %1 {offsets = [0, 10], sizes = [8, 1], strides = [1, 1]} : vector<24x128xf32> to vector<8x1xf32>
    %4 = vector.extract_strided_slice %1 {offsets = [8, 0], sizes = [8, 8], strides = [1, 1]} : vector<24x128xf32> to vector<8x8xf32>
    %5 = vector.extract_strided_slice %1 {offsets = [8, 8], sizes = [8, 1], strides = [1, 1]} : vector<24x128xf32> to vector<8x1xf32>
    %6 = vector.extract_strided_slice %1 {offsets = [16, 0], sizes = [4, 8], strides = [1, 1]} : vector<24x128xf32> to vector<4x8xf32>
    %7 = vector.extract_strided_slice %1 {offsets = [16, 8], sizes = [4, 1], strides = [1, 1]} : vector<24x128xf32> to vector<4x1xf32>
    %cst = arith.constant dense<0.000000e+00> : vector<8x128xf32>
    %8 = tpu.matmul %2, %0, %cst {dimension_numbers = #tpu.dot_dimension_numbers<[1], [1], [0], [0], [0, 0, 1, 0], [], []>, precision = #tpu.contract_precision<fp32>} : vector<8x10xf32>, vector<128x10xf32>, vector<8x128xf32> -> vector<8x128xf32>
    %9 = vector.broadcast %3 : vector<8x1xf32> to vector<8x128xf32>
    %10 = arith.addf %8, %9 : vector<8x128xf32>
    %cst_3 = arith.constant 0.000000e+00 : f32
    %11 = vector.broadcast %cst_3 : f32 to vector<8x128xf32>
    %12 = arith.maximumf %10, %11 : vector<8x128xf32>
    %cst_4 = arith.constant dense<0.000000e+00> : vector<8x128xf32>
    %13 = tpu.matmul %4, %12, %cst_4 {dimension_numbers = #tpu.dot_dimension_numbers<[1], [0], [0], [1], [0, 0, 1, 1], [], []>, precision = #tpu.contract_precision<fp32>} : vector<8x8xf32>, vector<8x128xf32>, vector<8x128xf32> -> vector<8x128xf32>
    %14 = vector.broadcast %5 : vector<8x1xf32> to vector<8x128xf32>
    %15 = arith.addf %13, %14 : vector<8x128xf32>
    %cst_5 = arith.constant 0.000000e+00 : f32
    %16 = vector.broadcast %cst_5 : f32 to vector<8x128xf32>
    %17 = arith.maximumf %15, %16 : vector<8x128xf32>
    %cst_6 = arith.constant dense<0.000000e+00> : vector<4x128xf32>
    %18 = tpu.matmul %6, %17, %cst_6 {dimension_numbers = #tpu.dot_dimension_numbers<[1], [0], [0], [1], [0, 0, 1, 1], [], []>, precision = #tpu.contract_precision<fp32>} : vector<4x8xf32>, vector<8x128xf32>, vector<4x128xf32> -> vector<4x128xf32>
    %19 = vector.broadcast %7 : vector<4x1xf32> to vector<4x128xf32>
    %20 = arith.addf %18, %19 : vector<4x128xf32>
    %c0_7 = arith.constant 0 : index
    %c0_8 = arith.constant 0 : index
    %21 = vector.load %arg3[%c0_7, %c0_8] : memref<4x128xf32, #tpu.memory_space<vmem>>, vector<4x128xf32>
    tpu.vector_store %arg3[%c0_7, %c0_8], %20 {strides = array<i32>} : memref<4x128xf32, #tpu.memory_space<vmem>>, vector<4x128xf32>,
    return
  }
  func.func @transform_0(%arg0: i32) -> (i32, i32) {
    %c0_i32 = arith.constant 0 : i32
    %c0_i32_0 = arith.constant 0 : i32
    return %arg0, %c0_i32 : i32, i32
  }
  func.func @transform_1(%arg0: i32) -> (i32, i32) {
    %c0_i32 = arith.constant 0 : i32
    %c0_i32_0 = arith.constant 0 : i32
    %c0_i32_1 = arith.constant 0 : i32
    return %c0_i32, %c0_i32_0 : i32, i32
  }
  func.func @transform_2(%arg0: i32) -> (i32, i32) {
    %c0_i32 = arith.constant 0 : i32
    %c0_i32_0 = arith.constant 0 : i32
    return %c0_i32, %arg0 : i32, i32
  }
}

</mosaic_0001>

<bundles_post_ra>
// kernel: linear_test_net.1
= control target key start
LH: loop header
LB: loop body
LE: loop exit
PB: predicated region body
PF: predicated region fallthrough
CT: control target
= control target key end

     0   :  { %vm36_vm0 = vcmask 80896   ;;  %v2257_v3 = vmov 0.0|0.0   ;;  %s2621_s0 = inlined_call_operand.vmem [shape: f32[8,10], index: 0, kind: input, shape index: {}]   ;;  %s2622_s1 = inlined_call_operand.vmem [shape: f32[24,128], index: 1, kind: input, shape index: {}]   ;;  %s2623_s2 = inlined_call_operand.hbm [shape: f32[4,8], index: 2, kind: output, shape index: {}]  }
   0x1   :  { %v12_v0 = vld [vmem:[%s2621_s0] sm:$0xff]  ;;  %v13_v1 = vld [vmem:[%s2621_s0 + $0x8] sm:$0xff]  ;;  %v14_v2 = vld [vmem:[%s2621_s0 + $0x10] sm:$0xff]  ;;  %2048 = vmatprep.subr.bf16.mxu1 %v2257_v3  ;;  %2120 = vmatprep.subr.bf16.mxu0 %v2257_v3 }
   0x2   :  { %v40_v4 = vsel %vm36_vm0, %v12_v0, 0  ;;  %v43_v5 = vsel %vm36_vm0, %v13_v1, 0  ;;  %v15_v6 = vld [vmem:[%s2621_s0 + $0x18] sm:$0xff]  ;;  %v46_v9 = vsel %vm36_vm0, %v14_v2, 0 }
   0x3   :  { %v88_v7 = vand.u32 4294901760, %v40_v4  ;;  %v91_v8 = vand.u32 4294901760, %v43_v5  ;;  %v49_v10 = vsel %vm36_vm0, %v15_v6, 0  ;;  %v94_v12 = vand.u32 4294901760, %v46_v9 }
   0x4   :  { %v97_v13 = vand.u32 4294901760, %v49_v10 }
   0x5   :  { %v2296_v11 = vpack.c.bf16 %v91_v8, %v88_v7 }
   0x7   :  { %2050 = vmatpush3.bf16.xpose.msra.mxu1 %v2296_v11  ;;  %2122 = vmatpush3.bf16.xpose.msra.mxu0 %v2296_v11 }
   0x8   :  { %2051 = vmatprep.subr.bf16.mxu1 %v2257_v3  ;;  %2123 = vmatprep.subr.bf16.mxu0 %v2257_v3 }
   0x9   :  { %7 = vsyncpa [#allocation3], 0  ;;  %v16_v14 = vld [vmem:[%s2621_s0 + $0x20] sm:$0xff]  ;;  %v17_v15 = vld [vmem:[%s2621_s0 + $0x28] sm:$0xff]  ;;  %v2308_v16 = vpack.c.bf16 %v97_v13, %v94_v12  ;;  %vm2258_vm1 = vmmov 0   ;;  %v2259_v23 = vmov 0.0   ;;  %v2344_v34 = vsub.f32 %v40_v4, %v88_v7 }
   0xa   :  { %v52_v17 = vsel %vm36_vm0, %v16_v14, 0  ;;  %v55_v18 = vsel %vm36_vm0, %v17_v15, 0  ;;  %v18_v21 = vld [vmem:[%s2621_s0 + $0x30] sm:$0xff]  ;;  %v19_v22 = vld [vmem:[%s2621_s0 + $0x38] sm:$0xff]  ;;  %1810 = vmatprep.mubr.msk.f32.mxu1 %vm2258_vm1, %v2259_v23  ;;  %1915 = vmatprep.mubr.msk.f32.mxu0 %vm2258_vm1, %v2259_v23  ;;  %v20_v29 = vld [vmem:[%s2621_s0 + $0x40] sm:$0xff]  ;;  %v2346_v35 = vsub.f32 %v43_v5, %v91_v8  ;;  %v2348_v36 = vsub.f32 %v46_v9, %v94_v12 }
   0xb   :  { %v100_v19 = vand.u32 4294901760, %v52_v17  ;;  %v103_v20 = vand.u32 4294901760, %v55_v18  ;;  %v58_v25 = vsel %vm36_vm0, %v18_v21, 0  ;;  %v61_v26 = vsel %vm36_vm0, %v19_v22, 0  ;;  %v21_v30 = vld [vmem:[%s2621_s0 + $0x48] sm:$0xff]  ;;  %v22_v43 = vld [vmem:[%s2621_s0 + $0x50] sm:$0xff] }
   0xc   :  { %v106_v27 = vand.u32 4294901760, %v58_v25  ;;  %v109_v28 = vand.u32 4294901760, %v61_v26  ;;  %v64_v31 = vsel %vm36_vm0, %v20_v29, 0  ;;  %v67_v33 = vsel %vm36_vm0, %v21_v30, 0  ;;  %v23_v44 = vld [vmem:[%s2621_s0 + $0x58] sm:$0xff]  ;;  %v24_v60 = vld [vmem:[%s2621_s0 + $0x60] sm:$0xff] }
   0xd   :  { %v2326_v24 = vpack.c.bf16 %v103_v20, %v100_v19  ;;  %v2350_v37 = vsub.f32 %v49_v10, %v97_v13  ;;  %v112_v38 = vand.u32 4294901760, %v64_v31  ;;  %v2352_v39 = vsub.f32 %v52_v17, %v100_v19  ;;  %v25_v61 = vld [vmem:[%s2621_s0 + $0x68] sm:$0xff]  ;;  %v2411_v5 = vld [vmem:[%s2622_s1] sm:$0xff]  ;;  %v26_v8 = vld [vmem:[%s2621_s0 + $0x70] sm:$0xff] }
   0xe   :  { %v2341_v32 = vpack.c.bf16 %v109_v28, %v106_v27  ;;  %v2354_v40 = vsub.f32 %v55_v18, %v103_v20  ;;  %v2356_v41 = vsub.f32 %v58_v25, %v106_v27  ;;  %v115_v42 = vand.u32 4294901760, %v67_v33  ;;  %v27_v9 = vld [vmem:[%s2621_s0 + $0x78] sm:$0xff] }
   0xf   :  { %2053 = vmatpush3.bf16.xpose.msra.mxu1 %v2308_v16  ;;  %2125 = vmatpush3.bf16.xpose.msra.mxu0 %v2308_v16  ;;  %v2365_v45 = vsub.f32 %v61_v26, %v109_v28  ;;  %v2368_v46 = vsub.f32 %v64_v31, %v112_v38  ;;  %v2097_v47 = vpack.c.bf16 %v2346_v35, %v2344_v34  ;;  %v70_v51 = vsel %vm36_vm0, %v22_v43, 0 }
  0x10   :  { %2054 = vmatprep.subr.bf16.mxu1 %v2257_v3  ;;  %2126 = vmatprep.subr.bf16.mxu0 %v2257_v3  ;;  %v2374_v48 = vsub.f32 %v67_v33, %v115_v42  ;;  %v2100_v49 = vpack.c.bf16 %v2350_v37, %v2348_v36  ;;  %v2103_v50 = vpack.c.bf16 %v2354_v40, %v2352_v39  ;;  %v73_v52 = vsel %vm36_vm0, %v23_v44, 0 }
  0x11   :  { %v2106_v53 = vpack.c.bf16 %v2365_v45, %v2356_v41  ;;  %v2386_v55 = vpack.c.bf16 %v115_v42, %v112_v38  ;;  %v118_v56 = vand.u32 4294901760, %v70_v51  ;;  %v121_v57 = vand.u32 4294901760, %v73_v52 }
  0x12   :  { %v2109_v54 = vpack.c.bf16 %v2374_v48, %v2368_v46  ;;  %v76_v63 = vsel %vm36_vm0, %v24_v60, 0  ;;  %v79_v0 = vsel %vm36_vm0, %v25_v61, 0  ;;  %v37_v10 = vsel %vm36_vm0, %v2411_v5, 0 }
  0x13   :  { %v2388_v58 = vsub.f32 %v70_v51, %v118_v56  ;;  %v2390_v59 = vsub.f32 %v73_v52, %v121_v57  ;;  %v2406_v1 = vpack.c.bf16 %v121_v57, %v118_v56  ;;  %v124_v2 = vand.u32 4294901760, %v76_v63 }
  0x14   :  { %v127_v4 = vand.u32 4294901760, %v79_v0  ;;  %v82_v13 = vsel %vm36_vm0, %v26_v8, 0  ;;  %v85_v14 = vsel %vm36_vm0, %v27_v9, 0  ;;  %v2433_v15 = vand.u32 4294901760, %v37_v10 }
  0x15   :  { %v2112_v62 = vpack.c.bf16 %v2390_v59, %v2388_v58  ;;  %v2413_v6 = vsub.f32 %v76_v63, %v124_v2  ;;  %v130_v18 = vand.u32 4294901760, %v82_v13  ;;  %v133_v19 = vand.u32 4294901760, %v85_v14 }
  0x16   :  { %v2415_v7 = vsub.f32 %v79_v0, %v127_v4  ;;  %v2435_v17 = vpack.c.bf16 %v127_v4, %v124_v2  ;;  %v2442_v22 = vsub.f32 %v37_v10, %v2433_v15  ;;  %v181_v25 = vand.u32 4294901760, %v2344_v34 }
  0x17   :  { %2056 = vmatpush3.bf16.xpose.msra.mxu1 %v2326_v24  ;;  %2128 = vmatpush3.bf16.xpose.msra.mxu0 %v2326_v24  ;;  %v2437_v20 = vsub.f32 %v82_v13, %v130_v18  ;;  %v2439_v21 = vsub.f32 %v85_v14, %v133_v19  ;;  %v188_v26 = vand.u32 4294901760, %v2346_v35  ;;  %v2453_v29 = vpack.c.bf16 %v133_v19, %v130_v18 }
  0x18   :  { %2057 = vmatprep.subr.bf16.mxu1 %v2257_v3  ;;  %2129 = vmatprep.subr.bf16.mxu0 %v2257_v3  ;;  %v2115_v12 = vpack.c.bf16 %v2415_v7, %v2413_v6  ;;  %v170_v28 = vand.u32 4294901760, %v2442_v22  ;;  %v182_v30 = vsub.f32 %v2344_v34, %v181_v25  ;;  %v195_v43 = vand.u32 4294901760, %v2348_v36 }
  0x19   :  { %v2118_v27 = vpack.c.bf16 %v2439_v21, %v2437_v20  ;;  %v189_v31 = vsub.f32 %v2346_v35, %v188_v26  ;;  %v202_v44 = vand.u32 4294901760, %v2350_v37  ;;  %v2145_v56 = vpack.c.bf16 %v188_v26, %v181_v25 }
  0x1a   :  { %v171_v33 = vsub.f32 %v2442_v22, %v170_v28  ;;  %v183_v38 = vand.u32 4294901760, %v182_v30  ;;  %v196_v57 = vsub.f32 %v2348_v36, %v195_v43  ;;  %v209_v61 = vand.u32 4294901760, %v2352_v39 }
  0x1b   :  { %v190_v42 = vand.u32 4294901760, %v189_v31  ;;  %v203_v60 = vsub.f32 %v2350_v37, %v202_v44  ;;  %v216_v2 = vand.u32 4294901760, %v2354_v40  ;;  %v2260_v4 = vmov 10  }
  0x1c   :  { %v172_v51 = vand.u32 4294901760, %v171_v33  ;;  %v197_v63 = vand.u32 4294901760, %v196_v57  ;;  %2230 = vset.pattern.permute.xlu0 %v2260_v4  ;;  %v2148_v9 = vpack.c.bf16 %v202_v44, %v195_v43  ;;  %v210_v10 = vsub.f32 %v2352_v39, %v209_v61 }
  0x1d   :  { %v2073_v52 = vpack.c.bf16 %v190_v42, %v183_v38  ;;  %v204_v0 = vand.u32 4294901760, %v203_v60  ;;  %v217_v13 = vsub.f32 %v2354_v40, %v216_v2  ;;  %33 = vperm.xlu0 %2230, %v2411_v5   ;;  %v223_v19 = vand.u32 4294901760, %v2356_v41 }
  0x1e   :  { %v211_v14 = vand.u32 4294901760, %v210_v10  ;;  %v230_v25 = vand.u32 4294901760, %v2365_v45  ;;  %v237_v38 = vand.u32 4294901760, %v2368_v46  ;;  %v244_v42 = vand.u32 4294901760, %v2374_v48 }
  0x1f   :  { %2059 = vmatpush3.bf16.xpose.msra.mxu1 %v2341_v32  ;;  %2131 = vmatpush3.bf16.xpose.msra.mxu0 %v2341_v32  ;;  %v2076_v8 = vpack.c.bf16 %v204_v0, %v197_v63  ;;  %v218_v18 = vand.u32 4294901760, %v217_v13  ;;  %v224_v30 = vsub.f32 %v2356_v41, %v223_v19  ;;  %v251_v60 = vand.u32 4294901760, %v2388_v58 }
  0x20   :  { %2060 = vmatprep.subr.bf16.mxu1 %v2257_v3  ;;  %2132 = vmatprep.subr.bf16.mxu0 %v2257_v3  ;;  %v231_v31 = vsub.f32 %v2365_v45, %v230_v25  ;;  %v2154_v44 = vpack.c.bf16 %v230_v25, %v223_v19  ;;  %v2157_v0 = vpack.c.bf16 %v244_v42, %v237_v38  ;;  %v265_v10 = vand.u32 4294901760, %v2413_v6 }
  0x21   :  { %v2079_v26 = vpack.c.bf16 %v218_v18, %v211_v14  ;;  %v225_v5 = vand.u32 4294901760, %v224_v30  ;;  %v272_v13 = vand.u32 4294901760, %v2415_v7  ;;  %v279_v30 = vand.u32 4294901760, %v2437_v20 }
  0x22   :  { %v232_v33 = vand.u32 4294901760, %v231_v31  ;;  %v266_v19 = vsub.f32 %v2413_v6, %v265_v10  ;;  %v286_v31 = vand.u32 4294901760, %v2439_v21  ;;  %vm734_vm2 = vcmask 64512  }
  0x23   :  { %v273_v25 = vsub.f32 %v2415_v7, %v272_v13 }
  0x24   :  { %v2082_v43 = vpack.c.bf16 %v232_v33, %v225_v5  ;;  %v2163_v33 = vpack.c.bf16 %v272_v13, %v265_v10 }
  0x27   :  { %2062 = vmatpush3.bf16.xpose.msra.mxu1 %v2386_v55  ;;  %2134 = vmatpush3.bf16.xpose.msra.mxu0 %v2386_v55 }
  0x28   :  { %2063 = vmatprep.subr.bf16.mxu1 %v2257_v3  ;;  %2135 = vmatprep.subr.bf16.mxu0 %v2257_v3 }
  0x2f   :  { %2065 = vmatpush3.bf16.xpose.msra.mxu1 %v2406_v1  ;;  %2137 = vmatpush3.bf16.xpose.msra.mxu0 %v2406_v1 }
  0x30   :  { %2066 = vmatprep.subr.bf16.mxu1 %v2257_v3  ;;  %2138 = vmatprep.subr.bf16.mxu0 %v2257_v3 }
  0x37   :  { %2068 = vmatpush3.bf16.xpose.msra.mxu1 %v2435_v17  ;;  %2140 = vmatpush3.bf16.xpose.msra.mxu0 %v2435_v17 }
  0x38   :  { %2069 = vmatprep.subr.bf16.mxu1 %v2257_v3  ;;  %2141 = vmatprep.subr.bf16.mxu0 %v2257_v3 }
  0x3f   :  { %2071 = vmatpush3.bf16.xpose.msra.mxu1 %v2453_v29  ;;  %2143 = vmatpush3.bf16.xpose.msra.mxu0 %v2453_v29 }
  0x40   :  { %2072 = vmatprep.subr.bf16.mxu1 %v2257_v3  ;;  %2144 = vmatprep.subr.bf16.mxu0 %v2257_v3 }
  0x46   :  { %1811 = vmatmul.mubr.f32.vlgmr.msra.gmra.mrb[0].mxu1 %v172_v51  ;;  %1916 = vmatmul.mubr.f32.vlgmr.msra.gmra.mrb[0].mxu0 %v170_v28  ;;  %v2151_v28 = vpack.c.bf16 %v216_v2, %v209_v61  ;;  %v238_v51 = vsub.f32 %v2368_v46, %v237_v38  ;;  %v258_v61 = vand.u32 4294901760, %v2390_v59  ;;  %v252_v2 = vsub.f32 %v2388_v58, %v251_v60  ;;  %v30_v58 = vld [vmem:[%s2622_s1 + $0x10] sm:$0xff] }
  0x47   :  { %2074 = vmatpush3.bf16.xpose.msra.mxu1 %v2073_v52  ;;  %2146 = vmatpush3.bf16.xpose.msra.mxu0 %v2145_v56  ;;  %v245_v52 = vsub.f32 %v2374_v48, %v244_v42  ;;  %v280_v38 = vsub.f32 %v2437_v20, %v279_v30  ;;  %v287_v42 = vsub.f32 %v2439_v21, %v286_v31 }
  0x48   :  { %2075 = vmatprep.subr.bf16.mxu1 %v2257_v3  ;;  %2147 = vmatprep.subr.bf16.mxu0 %v2257_v3  ;;  %v239_v56 = vand.u32 4294901760, %v238_v51  ;;  %v259_v4 = vsub.f32 %v2390_v59, %v258_v61  ;;  %v2160_v18 = vpack.c.bf16 %v258_v61, %v251_v60  ;;  %v1189_v59 = vsel %vm734_vm2, %v30_v58, 0 }
  0x49   :  { %1845 = vmatprep.mubr.msk.f32.mxu1 %vm2258_vm1, %v2259_v23  ;;  %1950 = vmatprep.mubr.msk.f32.mxu0 %vm2258_vm1, %v2259_v23  ;;  %v246_v57 = vand.u32 4294901760, %v245_v52  ;;  %v2166_v52 = vpack.c.bf16 %v286_v31, %v279_v30 }
  0x4b   :  { %v2085_v63 = vpack.c.bf16 %v246_v57, %v239_v56 }
  0x4f   :  { %2077 = vmatpush3.bf16.xpose.msra.mxu1 %v2076_v8  ;;  %2149 = vmatpush3.bf16.xpose.msra.mxu0 %v2148_v9  ;;  %v253_v8 = vand.u32 4294901760, %v252_v2  ;;  %v260_v9 = vand.u32 4294901760, %v259_v4 }
  0x50   :  { %2078 = vmatprep.subr.bf16.mxu1 %v2257_v3  ;;  %2150 = vmatprep.subr.bf16.mxu0 %v2257_v3 }
  0x51   :  { %v2088_v14 = vpack.c.bf16 %v260_v9, %v253_v8 }
  0x57   :  { %2080 = vmatpush3.bf16.xpose.msra.mxu1 %v2079_v26  ;;  %2152 = vmatpush3.bf16.xpose.msra.mxu0 %v2151_v28  ;;  %v267_v26 = vand.u32 4294901760, %v266_v19  ;;  %v274_v28 = vand.u32 4294901760, %v273_v25 }
  0x58   :  { %2081 = vmatprep.subr.bf16.mxu1 %v2257_v3  ;;  %2153 = vmatprep.subr.bf16.mxu0 %v2257_v3 }
  0x59   :  { %v2091_v5 = vpack.c.bf16 %v274_v28, %v267_v26 }
  0x5f   :  { %2083 = vmatpush3.bf16.xpose.msra.mxu1 %v2082_v43  ;;  %2155 = vmatpush3.bf16.xpose.msra.mxu0 %v2154_v44  ;;  %v281_v43 = vand.u32 4294901760, %v280_v38  ;;  %v288_v44 = vand.u32 4294901760, %v287_v42 }
  0x60   :  { %2084 = vmatprep.subr.bf16.mxu1 %v2257_v3  ;;  %2156 = vmatprep.subr.bf16.mxu0 %v2257_v3 }
  0x61   :  { %v2094_v51 = vpack.c.bf16 %v288_v44, %v281_v43 }
  0x67   :  { %2086 = vmatpush3.bf16.xpose.msra.mxu1 %v2085_v63  ;;  %2158 = vmatpush3.bf16.xpose.msra.mxu0 %v2157_v0 }
  0x68   :  { %2087 = vmatprep.subr.bf16.mxu1 %v2257_v3  ;;  %2159 = vmatprep.subr.bf16.mxu0 %v2257_v3 }
  0x6f   :  { %2089 = vmatpush3.bf16.xpose.msra.mxu1 %v2088_v14  ;;  %2161 = vmatpush3.bf16.xpose.msra.mxu0 %v2160_v18 }
  0x70   :  { %2090 = vmatprep.subr.bf16.mxu1 %v2257_v3  ;;  %2162 = vmatprep.subr.bf16.mxu0 %v2257_v3 }
  0x77   :  { %2092 = vmatpush3.bf16.xpose.msra.mxu1 %v2091_v5  ;;  %2164 = vmatpush3.bf16.xpose.msra.mxu0 %v2163_v33 }
  0x78   :  { %2093 = vmatprep.subr.bf16.mxu1 %v2257_v3  ;;  %2165 = vmatprep.subr.bf16.mxu0 %v2257_v3 }
  0x7f   :  { %2095 = vmatpush3.bf16.xpose.msra.mxu1 %v2094_v51  ;;  %2167 = vmatpush3.bf16.xpose.msra.mxu0 %v2166_v52 }
  0x80   :  { %2096 = vmatprep.subr.bf16.mxu1 %v2257_v3  ;;  %2168 = vmatprep.subr.bf16.mxu0 %v2257_v3 }
  0x86   :  { %1846 = vmatmul.mubr.f32.vlgmr.msra.gmra.mrb[0].mxu1 %v2433_v15  ;;  %1951 = vmatmul.mubr.f32.vlgmr.msra.gmra.mrb[0].mxu0 %v2433_v15 }
  0x87   :  { %2098 = vmatpush3.bf16.xpose.msra.mxu1 %v2097_v47  ;;  %2170 = vmatpush3.bf16.xpose.msra.mxu0 %v2296_v11  ;;  %v2261_v11 = vmov 8  }
  0x88   :  { %2099 = vmatprep.subr.bf16.mxu1 %v2257_v3  ;;  %2171 = vmatprep.subr.bf16.mxu0 %v2257_v3 }
  0x89   :  { %1880 = vmatprep.mubr.msk.f32.mxu1 %vm2258_vm1, %v2259_v23  ;;  %1985 = vmatprep.mubr.msk.f32.mxu0 %vm2258_vm1, %v2259_v23 }
  0x8a   :  { %2231 = vset.pattern.permute.xlu0 %v2261_v11  ;;  %2232 = vset.pattern.permute.xlu1 %v2261_v11 }
  0x8b   :  { %1186 = vperm.xlu1 %2232, %v30_v58  }
  0x8f   :  { %2101 = vmatpush3.bf16.xpose.msra.mxu1 %v2100_v49  ;;  %2173 = vmatpush3.bf16.xpose.msra.mxu0 %v2308_v16 }
  0x90   :  { %2102 = vmatprep.subr.bf16.mxu1 %v2257_v3  ;;  %2174 = vmatprep.subr.bf16.mxu0 %v2257_v3 }
  0x97   :  { %2104 = vmatpush3.bf16.xpose.msra.mxu1 %v2103_v50  ;;  %2176 = vmatpush3.bf16.xpose.msra.mxu0 %v2326_v24 }
  0x98   :  { %2105 = vmatprep.subr.bf16.mxu1 %v2257_v3  ;;  %2177 = vmatprep.subr.bf16.mxu0 %v2257_v3 }
  0x9c   :  { %v34_v34 = vpop.permute.xlu0 %33 }
  0x9f   :  { %2107 = vmatpush3.bf16.xpose.msra.mxu1 %v2106_v53  ;;  %2179 = vmatpush3.bf16.xpose.msra.mxu0 %v2341_v32 }
  0xa0   :  { %2108 = vmatprep.subr.bf16.mxu1 %v2257_v3  ;;  %2180 = vmatprep.subr.bf16.mxu0 %v2257_v3 }
  0xa7   :  { %2110 = vmatpush3.bf16.xpose.msra.mxu1 %v2109_v54  ;;  %2182 = vmatpush3.bf16.xpose.msra.mxu0 %v2386_v55 }
  0xa8   :  { %2111 = vmatprep.subr.bf16.mxu1 %v2257_v3  ;;  %2183 = vmatprep.subr.bf16.mxu0 %v2257_v3 }
  0xaf   :  { %2113 = vmatpush3.bf16.xpose.msra.mxu1 %v2112_v62  ;;  %2185 = vmatpush3.bf16.xpose.msra.mxu0 %v2406_v1  ;;  %v1257_v62 = vand.u32 4294901760, %v1189_v59 }
  0xb0   :  { %2114 = vmatprep.subr.bf16.mxu1 %v2257_v3  ;;  %2186 = vmatprep.subr.bf16.mxu0 %v2257_v3 }
  0xb1   :  { %v1258_v1 = vsub.f32 %v1189_v59, %v1257_v62 }
  0xb3   :  { %v1259_v6 = vand.u32 4294901760, %v1258_v1 }
  0xb7   :  { %2116 = vmatpush3.bf16.xpose.msra.mxu1 %v2115_v12  ;;  %2188 = vmatpush3.bf16.xpose.msra.mxu0 %v2435_v17 }
  0xb8   :  { %2117 = vmatprep.subr.bf16.mxu1 %v2257_v3  ;;  %2189 = vmatprep.subr.bf16.mxu0 %v2257_v3  ;;  %v29_v3 = vld [vmem:[%s2622_s1 + $0x8] sm:$0xff]  ;;  %s2262_s1 = smov [#allocation2]  }
  0xb9   :  { %731 = vperm.xlu0 %2231, %v29_v3   ;;  %v735_v16 = vsel %vm734_vm2, %v29_v3, 0  ;;  %s1644_s18 = sshll.u32 %s2262_s1, 4  ;;  %s1645_s18 = int_to_ptr.vmem [resolvable:$true] %s1644_s18 }
  0xba   :  { %v803_v24 = vand.u32 4294901760, %v735_v16  ;;  %s2233_s19 = scalar_lea.vmem %s1645_s18, 64  ;;  %p2238_p1 = scmp.lt.s32.totalorder %s1645_s18, %s1645_s18 }
  0xbb   :  { %p2234_p0 = scmp.ne.s32.totalorder %s1645_s18, %s2233_s19  ;;  %p2239_p2 = scmp.lt.s32.totalorder %s2233_s19, %s2233_s19 }
  0xbc   :  { %v804_v32 = vsub.f32 %v735_v16, %v803_v24 }
  0xbd   :  { %p2240_p3 = por %p2239_p2, %p2238_p1 }
  0xbe   :  { %v805_v35 = vand.u32 4294901760, %v804_v32 }
  0xbf   :  { %2119 = vmatpush3.bf16.xpose.msra.mxu1 %v2118_v27  ;;  %2191 = vmatpush3.bf16.xpose.msra.mxu0 %v2453_v29  ;;  %p2241_p4 = pnand %p2240_p3, %p2234_p0 }
  0xc0   :  { %1988 = vmatprep.subr.mxu0 %v2259_v23  ;;  %2018 = vmatprep.subr.mxu1 %v2259_v23  ;;  %v806_v45 = vsub.f32 %v804_v32, %v805_v35 }
  0xc2   :  { %v807_v48 = vand.u32 4294901760, %v806_v45 }
  0xc6   :  { %1881 = vmatmul.mubr.f32.vlgmr.msra.gmra.mrb[0].mxu1 %v2442_v22  ;;  %1986 = vmatmul.mubr.f32.vlgmr.msra.gmra.mrb[0].mxu0 %v2433_v15  ;;  %v1260_v15 = vsub.f32 %v1258_v1, %v1259_v6 }
  0xc7   :  { %1990 = vmatprep.mubr.msk.f32.mxu0 %vm2258_vm1, %v2259_v23  ;;  %2020 = vmatprep.mubr.msk.f32.mxu1 %vm2258_vm1, %v2259_v23 }
  0xc8   :  { %v1261_v22 = vand.u32 4294901760, %v1260_v15 }
 0x10a   :  { %v1187_v61 = vpop.permute.xlu1 %1186 }
 0x138   :  { %v732_v7 = vpop.permute.xlu0 %731 }
 0x199   :  { %v429_v36 = vpop.f32.mrb[0].mxu1  ;;  %v724_v37 = vpop.f32.mrb[0].mxu0 }
 0x19a   :  { %v2192_v39 = vadd.f32 %v429_v36, %v34_v34  ;;  %v1882_v40 = vpop.f32.mrb[1].mxu1  ;;  %v1987_v41 = vpop.f32.mrb[1].mxu0 }
 0x19c   :  { %v2193_v46 = vadd.f32 %v2192_v39, %v724_v37 }
 0x19e   :  { %v728_v47 = vmax.f32 %v2193_v46, 0.0 }
 0x1a0   :  { %v738_v49 = vand.u32 4294901760, %v728_v47 }
 0x1a2   :  { %v815_v50 = vsub.f32 %v728_v47, %v738_v49  ;;  %1989 = vmatpush3.msra.mxu0 %v738_v49 }
 0x1a3   :  { %1991 = vmatmul.mubr.f32.vlgmr.msra.gmra.mrb[2].mxu0 %v807_v48  ;;  %1993 = vmatprep.subr.mxu0 %v2259_v23 }
 0x1a4   :  { %v816_v53 = vand.u32 4294901760, %v815_v50  ;;  %1995 = vmatprep.mubr.msk.f32.mxu0 %vm2258_vm1, %v2259_v23 }
 0x1a6   :  { %v817_v54 = vsub.f32 %v815_v50, %v816_v53 }
 0x1a8   :  { %v818_v55 = vand.u32 4294901760, %v817_v54 }
 0x1aa   :  { %1994 = vmatpush3.msra.mxu0 %v818_v55 }
 0x1ab   :  { %1996 = vmatmul.mubr.f32.vlgmr.msra.gmra.mrb[2].mxu0 %v803_v24  ;;  %1998 = vmatprep.subr.mxu0 %v2259_v23 }
 0x1ac   :  { %1999 = vmatpush3.msra.mxu0 %v815_v50  ;;  %2000 = vmatprep.mubr.msk.f32.mxu0 %vm2258_vm1, %v2259_v23 }
 0x1ad   :  { %2003 = vmatprep.subr.mxu0 %v2259_v23 }
 0x1b3   :  { %2001 = vmatmul.mubr.f32.vlgmr.msra.gmra.mrb[2].mxu0 %v804_v32 }
 0x1b4   :  { %2004 = vmatpush3.msra.mxu0 %v738_v49  ;;  %2005 = vmatprep.mubr.msk.f32.mxu0 %vm2258_vm1, %v2259_v23 }
 0x1b5   :  { %2008 = vmatprep.subr.mxu0 %v2259_v23 }
 0x1bb   :  { %2006 = vmatmul.mubr.f32.vlgmr.msra.gmra.mrb[2].mxu0 %v805_v35 }
 0x1bc   :  { %2009 = vmatpush3.msra.mxu0 %v816_v53  ;;  %2010 = vmatprep.mubr.msk.f32.mxu0 %vm2258_vm1, %v2259_v23 }
 0x1bd   :  { %2013 = vmatprep.subr.mxu0 %v2259_v23 }
 0x1c3   :  { %2011 = vmatmul.mubr.f32.vlgmr.msra.gmra.mrb[2].mxu0 %v803_v24 }
 0x1c4   :  { %2014 = vmatpush3.msra.mxu0 %v738_v49  ;;  %2015 = vmatprep.mubr.msk.f32.mxu0 %vm2258_vm1, %v2259_v23 }
 0x1cb   :  { %2016 = vmatmul.mubr.f32.vlgmr.msra.gmra.mrb[2].mxu0 %v803_v24 }
 0x29e   :  { %v1179_v12 = vpop.f32.mrb[2].mxu0 }
 0x29f   :  { %v2194_v17 = vadd.f32 %v1179_v12, %v732_v7  ;;  %v2017_v20 = vpop.f32.mrb[3].mxu0 }
 0x2a1   :  { %v1183_v21 = vmax.f32 %v2194_v17, 0.0 }
 0x2a3   :  { %v1192_v27 = vand.u32 4294901760, %v1183_v21 }
 0x2a5   :  { %v1269_v29 = vsub.f32 %v1183_v21, %v1192_v27  ;;  %2019 = vmatpush3.msra.mxu1 %v1192_v27 }
 0x2a6   :  { %2021 = vmatmul.mubr.f32.vlgmr.msra.gmra.mrb[2].mxu1 %v1261_v22  ;;  %2023 = vmatprep.subr.mxu1 %v2259_v23 }
 0x2a7   :  { %v1270_v56 = vand.u32 4294901760, %v1269_v29  ;;  %2025 = vmatprep.mubr.msk.f32.mxu1 %vm2258_vm1, %v2259_v23 }
 0x2a9   :  { %v1271_v57 = vsub.f32 %v1269_v29, %v1270_v56 }
 0x2ab   :  { %v1272_v60 = vand.u32 4294901760, %v1271_v57 }
 0x2ad   :  { %2024 = vmatpush3.msra.mxu1 %v1272_v60 }
 0x2ae   :  { %2026 = vmatmul.mubr.f32.vlgmr.msra.gmra.mrb[2].mxu1 %v1257_v62  ;;  %2028 = vmatprep.subr.mxu1 %v2259_v23 }
 0x2af   :  { %2029 = vmatpush3.msra.mxu1 %v1269_v29  ;;  %2030 = vmatprep.mubr.msk.f32.mxu1 %vm2258_vm1, %v2259_v23 }
 0x2b0   :  { %2033 = vmatprep.subr.mxu1 %v2259_v23 }
 0x2b6   :  { %2031 = vmatmul.mubr.f32.vlgmr.msra.gmra.mrb[2].mxu1 %v1258_v1 }
 0x2b7   :  { %2034 = vmatpush3.msra.mxu1 %v1192_v27  ;;  %2035 = vmatprep.mubr.msk.f32.mxu1 %vm2258_vm1, %v2259_v23 }
 0x2b8   :  { %2038 = vmatprep.subr.mxu1 %v2259_v23 }
 0x2be   :  { %2036 = vmatmul.mubr.f32.vlgmr.msra.gmra.mrb[2].mxu1 %v1259_v6 }
 0x2bf   :  { %2039 = vmatpush3.msra.mxu1 %v1270_v56  ;;  %2040 = vmatprep.mubr.msk.f32.mxu1 %vm2258_vm1, %v2259_v23 }
 0x2c0   :  { %2043 = vmatprep.subr.mxu1 %v2259_v23 }
 0x2c6   :  { %2041 = vmatmul.mubr.f32.vlgmr.msra.gmra.mrb[2].mxu1 %v1257_v62 }
 0x2c7   :  { %2044 = vmatpush3.msra.mxu1 %v1192_v27  ;;  %2045 = vmatprep.mubr.msk.f32.mxu1 %vm2258_vm1, %v2259_v23 }
 0x2ce   :  { %2046 = vmatmul.mubr.f32.vlgmr.msra.gmra.mrb[2].mxu1 %v1257_v62 }
 0x3a1   :  { %v1633_v63 = vpop.f32.mrb[2].mxu1 }
 0x3a2   :  { %v2195_v0 = vadd.f32 %v1633_v63, %v1187_v61  ;;  %v2047_v2 = vpop.f32.mrb[3].mxu1 }
 0x3a4   :  { %1637 = vst [vmem:[#allocation2] sm:$0xf] %v2195_v0 }
 0x3a5   :  { %2244 = shalt.err (!%p2241_p4)
}
 0x3a6   :  { %s2245_s22 = scalar_lea.hbm %s2623_s2, 64 }
 0x3a7   :  { %p2246_p5 = scmp.ne.s32.totalorder %s2623_s2, %s2245_s22  ;;  %p2249_p6 = scmp.lt.u32.totalorder %s2245_s22, %s2623_s2 }
 0x3a9   :  { %p2251_p7 = pnand %p2249_p6, %p2246_p5 }
 0x3ab   :  { %2254 = shalt.err (!%p2251_p7)
}
 0x3ac   :  { %1647 = dma.vmem_to_hbm [thread:$0]  %s1645_s18, 64, %s2623_s2, [#allocation3]  }
 0x3ad   :  { %2255 = dma.done.wait [#allocation3], 64  }
 0x3ae   :  { %2256 = vsyncadd [#allocation3], 4294967232 }
 0x3af   :  { %1651 = vsyncpa [#allocation3], 1 }

</bundles_post_ra>
